<compile_context>
chip_gen: v6e
topology: v6e:2x2x1
jax: 0.10.0
libtpu: 0.0.40
codegen_flags: <defaults>
</compile_context>

<pallas_src>
import functools

import jax
import jax.numpy as jnp
from jax.experimental import pallas as pl
from jax.experimental.pallas import tpu as pltpu

SELU_ALPHA = 1.6732632423543772
SELU_SCALE = 1.0507009873554805


def _selu(x):
    return SELU_SCALE * jnp.where(x > 0, x, SELU_ALPHA * (jnp.exp(x) - 1.0))


def decomposable_kernel(emb_ref, sel_ref,
                        w1p_ref, fb1_ref, fw2_ref, fb2_ref,
                        gw1a_ref, gb1_ref, gw2_ref, gb2_ref,
                        hw1_ref, hb1_ref, hw2_ref, hb2_ref,
                        out_ref, *, B, Lp, Lh, H, mxu_dtype):
    Np, Nh = B * Lp, B * Lh
    emb_all = emb_ref[0]                       # (N, D) f32 for this replica
    D = emb_all.shape[-1]

    dt = mxu_dtype                             # f32 (default) or bf16 MXU operands

    def mm(a, b):
        return jnp.dot(a.astype(dt), b.astype(dt),
                       preferred_element_type=jnp.float32)

    def bmm(eq, a, b):
        return jnp.einsum(eq, a.astype(dt), b.astype(dt),
                          preferred_element_type=jnp.float32)

    # ---- packed first-layer matmul: F-layer1 and G-layer1(premise half) share
    #      the operand emb_all -> ONE (N,D)x(D,2H) MXU matmul, split on lanes.
    t = mm(emb_all, w1p_ref[...])              # (N, 2H)
    hF = _selu(t[:, :H] + fb1_ref[...])        # F hidden
    hG_emb = t[:, H:]                          # emb_all @ gw1[:D]  (no bias/act yet)
    f_all = _selu(mm(hF, fw2_ref[...]) + fb2_ref[...])   # (N, dF)

    dF = f_all.shape[-1]
    prem = emb_all[:Np].reshape(B, Lp, D)
    hypo = emb_all[Np:].reshape(B, Lh, D)
    fp = f_all[:Np].reshape(B, Lp, dF)
    fh = f_all[Np:].reshape(B, Lh, dF)

    # e = bmm(F(prem), F(hypo)^T) -> (B, Lp, Lh)
    e = bmm('bpf,bqf->bpq', fp, fh)

    # legacy F.softmax without dim on 3-D -> dim 0 (batch).  One pass suffices:
    # softmax(e.transpose(1,2), 0) == softmax(e, 0).transpose(1,2).
    m = jnp.max(e, axis=0, keepdims=True)
    ex = jnp.exp(e - m)
    e_soft = ex / jnp.sum(ex, axis=0, keepdims=True)      # (B, Lp, Lh)

    beta = bmm('bpq,bqd->bpd', e_soft, hypo)              # (B, Lp, D)
    # alpha = bmm(softmax(e^T,0), prem): contraction over p on e_soft directly,
    # no explicit swapaxes / (B,Lh,Lp) temp.
    alph = bmm('bpq,bpd->bqd', e_soft, prem)              # (B, Lh, D)

    # ---- G(cat(x, x_att, dim=2)) on all tokens, first-layer weight split so no
    #      lane-dim concat of activations is needed; single flattened chain.
    att_all = jnp.concatenate([beta.reshape(Np, D),
                               alph.reshape(Nh, D)], axis=0)          # (N, D)
    hG = _selu(hG_emb + mm(att_all, gw1a_ref[...]) + gb1_ref[...])
    g_all = _selu(mm(hG, gw2_ref[...]) + gb2_ref[...])                # (N, dG)

    # ---- per-example token sums (.sum(1)) as ONE stacked selection matmul (MXU).
    v12 = mm(sel_ref[...], g_all)              # (2B, dG): rows [:B]=v1, rows [B:]=v2
    h_in = jnp.concatenate([v12[:B], v12[B:]], axis=1)    # (B, 2*dG) == cat(v1,v2,1)

    # ---- H(.) with the whole (2*dG, H) first-layer weight (one matmul).
    h1 = _selu(mm(h_in, hw1_ref[...]) + hb1_ref[...])
    logits = _selu(mm(h1, hw2_ref[...]) + hb2_ref[...])   # (B, d_out)

    # .squeeze() is a no-op for B>1, d_out>1; F.softmax on 2-D -> dim 1.
    lm = jnp.max(logits, axis=-1, keepdims=True)
    le = jnp.exp(logits - lm)
    out_ref[0] = le / jnp.sum(le, axis=-1, keepdims=True)


def decomposable_forward(prem_ids, hypo_ids, p, *, use_bf16=False):
    """prem_ids/hypo_ids: (seq, batch) int32 like the PyTorch batch fields, or
    (replicas, seq, batch) for multiple independent requests (sharded across
    TensorCores via a "parallel" grid axis)."""
    squeeze_replica = prem_ids.ndim == 2
    if squeeze_replica:
        prem_ids = prem_ids[None]
        hypo_ids = hypo_ids[None]
    R, Lp, B = prem_ids.shape
    _, Lh, _ = hypo_ids.shape
    D = p['embed'].shape[1]
    H = p['fw1'].shape[1]
    d_out = p['hw2'].shape[1]
    Np, Nh = B * Lp, B * Lh
    N = Np + Nh

    # Batch-major token stream per replica (matches batch.premise.transpose(0,1)):
    # [ex0 prem tokens, ex1 prem tokens, ..., ex0 hypo tokens, ex1 hypo tokens, ...]
    ids = jnp.concatenate(
        [jnp.swapaxes(prem_ids, 1, 2).reshape(R, Np),
         jnp.swapaxes(hypo_ids, 1, 2).reshape(R, Nh)], axis=1).astype(jnp.int32)

    # Embedding gather stays OUTSIDE the kernel (plain XLA gather): the table never
    # has to fit in VMEM and no one-hot / O(N*V*D) MXU work is done.
    emb_all = jnp.take(p['embed'], ids, axis=0).astype(jnp.float32)   # (R, N, D)

    # Compile-time constant selection matrix for the .sum(1) token reductions
    # (built once in the wrapper, not with per-call iota/compare in the kernel).
    b = jnp.arange(B)[:, None]
    n = jnp.arange(N)[None, :]
    sel_p = (n >= b * Lp) & (n < (b + 1) * Lp)
    sel_h = (n >= Np + b * Lh) & (n < Np + (b + 1) * Lh)
    sel = jnp.concatenate([sel_p, sel_h], axis=0).astype(jnp.float32)  # (2B, N)

    # Lane-pack the two first-layer matmuls that share emb_all as an operand.
    w1_pack = jnp.concatenate([p['fw1'], p['gw1'][:D]], axis=1)        # (D, 2H)
    gw1a = p['gw1'][D:]                                                # (D, H)

    args = (emb_all, sel, w1_pack, p['fb1'], p['fw2'], p['fb2'],
            gw1a, p['gb1'], p['gw2'], p['gb2'],
            p['hw1'], p['hb1'], p['hw2'], p['hb2'])

    def _full_spec(x):
        nd = x.ndim
        return pl.BlockSpec(x.shape, lambda r, _nd=nd: (0,) * _nd)

    in_specs = ([pl.BlockSpec((1, N, D), lambda r: (r, 0, 0))]
                + [_full_spec(a) for a in args[1:]])
    out_spec = pl.BlockSpec((1, B, d_out), lambda r: (r, 0, 0))

    kernel = functools.partial(
        decomposable_kernel, B=B, Lp=Lp, Lh=Lh, H=H,
        mxu_dtype=jnp.bfloat16 if use_bf16 else jnp.float32)

    # NOTE: the batch axis cannot be tiled (legacy dim-0 softmax couples examples
    # within a batch), but independent replicas/requests can: the leading grid
    # axis is marked "parallel" so v7x's two TensorCores each take replicas.
    # TODO(synk): for sequence lengths where (B,Lp,Lh)+activations exceed scoped
    # VMEM, add Lp/Lh tiling with pl.when-guarded accumulators.
    out = pl.pallas_call(
        kernel,
        grid=(R,),
        out_shape=jax.ShapeDtypeStruct((R, B, d_out), jnp.float32),
        in_specs=in_specs,
        out_specs=out_spec,
        compiler_params=pltpu.CompilerParams(
            dimension_semantics=("parallel",)),
    )(*args)
    return out[0] if squeeze_replica else out


# ------------------------ parameter init + reference ------------------------

def init_params(key, n_embed, d_embed, d_hidden, d_F, d_G, d_out):
    ks = jax.random.split(key, 13)

    def lin(kw, kb, fan_in, fan_out):
        bound = 1.0 / jnp.sqrt(fan_in)
        w = jax.random.uniform(kw, (fan_in, fan_out), jnp.float32, -bound, bound)
        b = jax.random.uniform(kb, (1, fan_out), jnp.float32, -bound, bound)
        return w, b

    p = {}
    p['embed'] = jax.random.normal(ks[0], (n_embed, d_embed), jnp.float32)
    # F : d_embed -> d_hidden -> d_F
    p['fw1'], p['fb1'] = lin(ks[1], ks[2], d_embed, d_hidden)
    p['fw2'], p['fb2'] = lin(ks[3], ks[4], d_hidden, d_F)
    # G : 2*d_embed -> d_hidden -> d_G
    p['gw1'], p['gb1'] = lin(ks[5], ks[6], 2 * d_embed, d_hidden)
    p['gw2'], p['gb2'] = lin(ks[7], ks[8], d_hidden, d_G)
    # H : 2*d_G -> d_hidden -> d_out
    p['hw1'], p['hb1'] = lin(ks[9], ks[10], 2 * d_G, d_hidden)
    p['hw2'], p['hb2'] = lin(ks[11], ks[12], d_hidden, d_out)
    return p


def reference_forward(prem_ids, hypo_ids, p):
    prem = jnp.take(p['embed'], prem_ids.T, axis=0)
    hypo = jnp.take(p['embed'], hypo_ids.T, axis=0)

    def ffn(x, w1, b1, w2, b2):
        return _selu(_selu(x @ w1 + b1) @ w2 + b2)

    fp = ffn(prem, p['fw1'], p['fb1'], p['fw2'], p['fb2'])
    fh = ffn(hypo, p['fw1'], p['fb1'], p['fw2'], p['fb2'])
    e = fp @ jnp.swapaxes(fh, 1, 2)
    e_ = jax.nn.softmax(e, axis=0)
    e_t = jax.nn.softmax(jnp.swapaxes(e, 1, 2), axis=0)
    beta = e_ @ hypo
    alpha = e_t @ prem
    v1 = ffn(jnp.concatenate([prem, beta], -1),
             p['gw1'], p['gb1'], p['gw2'], p['gb2']).sum(1)
    v2 = ffn(jnp.concatenate([hypo, alpha], -1),
             p['gw1'], p['gb1'], p['gw2'], p['gb2']).sum(1)
    logits = ffn(jnp.concatenate([v1, v2], -1),
                 p['hw1'], p['hb1'], p['hw2'], p['hb2'])
    return jax.nn.softmax(logits, axis=-1)


if __name__ == "__main__":
    # small config consistent with the module
    n_embed, d_embed, d_hidden, d_F, d_G, d_out = 50, 32, 32, 32, 32, 4
    B, Lp, Lh = 2, 8, 16

    key = jax.random.PRNGKey(0)
    kp, kh, kp2, kh2, kw = jax.random.split(key, 5)
    prem_ids = jax.random.randint(kp, (Lp, B), 0, n_embed, dtype=jnp.int32)  # (seq, batch)
    hypo_ids = jax.random.randint(kh, (Lh, B), 0, n_embed, dtype=jnp.int32)  # (seq, batch)
    params = init_params(kw, n_embed, d_embed, d_hidden, d_F, d_G, d_out)

    # single request (f32 MXU operands, default)
    out = jax.block_until_ready(decomposable_forward(prem_ids, hypo_ids, params))
    ref = reference_forward(prem_ids, hypo_ids, params)
    assert out.shape == (B, d_out)
    assert jnp.allclose(out, ref, rtol=1e-3, atol=1e-4), (out, ref)

    # multi-replica path: leading "parallel" grid axis (shards across TCs on v7x)
    prem2 = jax.random.randint(kp2, (Lp, B), 0, n_embed, dtype=jnp.int32)
    hypo2 = jax.random.randint(kh2, (Lh, B), 0, n_embed, dtype=jnp.int32)
    out_r = jax.block_until_ready(decomposable_forward(
        jnp.stack([prem_ids, prem2]), jnp.stack([hypo_ids, hypo2]), params))
    ref2 = reference_forward(prem2, hypo2, params)
    assert out_r.shape == (2, B, d_out)
    assert jnp.allclose(out_r[0], ref, rtol=1e-3, atol=1e-4)
    assert jnp.allclose(out_r[1], ref2, rtol=1e-3, atol=1e-4)

    # optional bf16 MXU-operand mode (v6e/v7x peak path); f32 reference mode above
    # stays the default.  Only a sanity check here (bf16-level numeric error).
    out_bf16 = jax.block_until_ready(
        decomposable_forward(prem_ids, hypo_ids, params, use_bf16=True))
    assert out_bf16.shape == (B, d_out)
    assert bool(jnp.all(jnp.isfinite(out_bf16)))

    # TODO(synk): dropout is identity (eval mode); training-mode stochastic dropout not implemented.
    print("KERNEL_OK")
</pallas_src>

<mosaic_0001>
module attributes {stable_mosaic.version = 11 : i64} {
  func.func @decomposable_kernel(%arg0: i32, %arg1: memref<1x48x32xf32, #tpu.memory_space<vmem>>, %arg2: memref<4x48xf32, #tpu.memory_space<vmem>>, %arg3: memref<32x64xf32, #tpu.memory_space<vmem>>, %arg4: memref<1x32xf32, #tpu.memory_space<vmem>>, %arg5: memref<32x32xf32, #tpu.memory_space<vmem>>, %arg6: memref<1x32xf32, #tpu.memory_space<vmem>>, %arg7: memref<32x32xf32, #tpu.memory_space<vmem>>, %arg8: memref<1x32xf32, #tpu.memory_space<vmem>>, %arg9: memref<32x32xf32, #tpu.memory_space<vmem>>, %arg10: memref<1x32xf32, #tpu.memory_space<vmem>>, %arg11: memref<64x32xf32, #tpu.memory_space<vmem>>, %arg12: memref<1x32xf32, #tpu.memory_space<vmem>>, %arg13: memref<32x4xf32, #tpu.memory_space<vmem>>, %arg14: memref<1x4xf32, #tpu.memory_space<vmem>>, %arg15: memref<1x2x4xf32, #tpu.memory_space<vmem>>) attributes {dimension_semantics = [#tpu.dimension_semantics<parallel>], iteration_bounds = array<i64: 1>, scalar_prefetch = 0 : i64, scratch_operands = 0 : i64, tpu.core_type = #tpu.core_type<tc>, window_params = [{transform_indices = @transform_0, window_bounds = array<i64: 1, 48, 32>}, {pipeline_mode = #tpu.pipeline_mode<synchronous>, transform_indices = @transform_1, window_bounds = array<i64: 4, 48>}, {pipeline_mode = #tpu.pipeline_mode<synchronous>, transform_indices = @transform_2, window_bounds = array<i64: 32, 64>}, {pipeline_mode = #tpu.pipeline_mode<synchronous>, transform_indices = @transform_3, window_bounds = array<i64: 1, 32>}, {pipeline_mode = #tpu.pipeline_mode<synchronous>, transform_indices = @transform_4, window_bounds = array<i64: 32, 32>}, {pipeline_mode = #tpu.pipeline_mode<synchronous>, transform_indices = @transform_5, window_bounds = array<i64: 1, 32>}, {pipeline_mode = #tpu.pipeline_mode<synchronous>, transform_indices = @transform_6, window_bounds = array<i64: 32, 32>}, {pipeline_mode = #tpu.pipeline_mode<synchronous>, transform_indices = @transform_7, window_bounds = array<i64: 1, 32>}, {pipeline_mode = #tpu.pipeline_mode<synchronous>, transform_indices = @transform_8, window_bounds = array<i64: 32, 32>}, {pipeline_mode = #tpu.pipeline_mode<synchronous>, transform_indices = @transform_9, window_bounds = array<i64: 1, 32>}, {pipeline_mode = #tpu.pipeline_mode<synchronous>, transform_indices = @transform_10, window_bounds = array<i64: 64, 32>}, {pipeline_mode = #tpu.pipeline_mode<synchronous>, transform_indices = @transform_11, window_bounds = array<i64: 1, 32>}, {pipeline_mode = #tpu.pipeline_mode<synchronous>, transform_indices = @transform_12, window_bounds = array<i64: 32, 4>}, {pipeline_mode = #tpu.pipeline_mode<synchronous>, transform_indices = @transform_13, window_bounds = array<i64: 1, 4>}, {transform_indices = @transform_14, window_bounds = array<i64: 1, 2, 4>}]} {
    %c0 = arith.constant 0 : index
    %c0_0 = arith.constant 0 : index
    %c0_1 = arith.constant 0 : index
    %0 = vector.load %arg1[%c0, %c0_0, %c0_1] : memref<1x48x32xf32, #tpu.memory_space<vmem>>, vector<1x48x32xf32>
    %1 = vector.shape_cast %0 : vector<1x48x32xf32> to vector<48x32xf32>
    %c0_2 = arith.constant 0 : index
    %c0_3 = arith.constant 0 : index
    %2 = vector.load %arg3[%c0_2, %c0_3] : memref<32x64xf32, #tpu.memory_space<vmem>>, vector<32x64xf32>
    %cst = arith.constant dense<0.000000e+00> : vector<48x64xf32>
    %3 = tpu.matmul %1, %2, %cst {dimension_numbers = #tpu.dot_dimension_numbers<[1], [0], [0], [1], [0, 0, 1, 1], [], []>} : vector<48x32xf32>, vector<32x64xf32>, vector<48x64xf32> -> vector<48x64xf32>
    %4 = vector.extract_strided_slice %3 {offsets = [0, 0], sizes = [48, 32], strides = [1, 1]} : vector<48x64xf32> to vector<48x32xf32>
    %c0_4 = arith.constant 0 : index
    %c0_5 = arith.constant 0 : index
    %5 = vector.load %arg4[%c0_4, %c0_5] : memref<1x32xf32, #tpu.memory_space<vmem>>, vector<1x32xf32>
    %6 = vector.broadcast %5 : vector<1x32xf32> to vector<48x32xf32>
    %7 = arith.addf %4, %6 : vector<48x32xf32>
    %cst_6 = arith.constant 0.000000e+00 : f32
    %8 = vector.broadcast %cst_6 : f32 to vector<48x32xf32>
    %9 = arith.cmpf ogt, %7, %8 : vector<48x32xf32>
    %10 = math.exp %7 : vector<48x32xf32>
    %cst_7 = arith.constant 1.000000e+00 : f32
    %11 = vector.broadcast %cst_7 : f32 to vector<48x32xf32>
    %12 = arith.subf %10, %11 : vector<48x32xf32>
    %cst_8 = arith.constant 1.67326319 : f32
    %13 = vector.broadcast %cst_8 : f32 to vector<48x32xf32>
    %14 = arith.mulf %13, %12 : vector<48x32xf32>
    %15 = arith.select %9, %7, %14 : vector<48x32xi1>, vector<48x32xf32>
    %cst_9 = arith.constant 1.05070102 : f32
    %16 = vector.broadcast %cst_9 : f32 to vector<48x32xf32>
    %17 = arith.mulf %16, %15 : vector<48x32xf32>
    %18 = vector.extract_strided_slice %3 {offsets = [0, 32], sizes = [48, 32], strides = [1, 1]} : vector<48x64xf32> to vector<48x32xf32>
    %c0_10 = arith.constant 0 : index
    %c0_11 = arith.constant 0 : index
    %19 = vector.load %arg5[%c0_10, %c0_11] : memref<32x32xf32, #tpu.memory_space<vmem>>, vector<32x32xf32>
    %cst_12 = arith.constant dense<0.000000e+00> : vector<48x32xf32>
    %20 = tpu.matmul %17, %19, %cst_12 {dimension_numbers = #tpu.dot_dimension_numbers<[1], [0], [0], [1], [0, 0, 1, 1], [], []>} : vector<48x32xf32>, vector<32x32xf32>, vector<48x32xf32> -> vector<48x32xf32>
    %c0_13 = arith.constant 0 : index
    %c0_14 = arith.constant 0 : index
    %21 = vector.load %arg6[%c0_13, %c0_14] : memref<1x32xf32, #tpu.memory_space<vmem>>, vector<1x32xf32>
    %22 = vector.broadcast %21 : vector<1x32xf32> to vector<48x32xf32>
    %23 = arith.addf %20, %22 : vector<48x32xf32>
    %cst_15 = arith.constant 0.000000e+00 : f32
    %24 = vector.broadcast %cst_15 : f32 to vector<48x32xf32>
    %25 = arith.cmpf ogt, %23, %24 : vector<48x32xf32>
    %26 = math.exp %23 : vector<48x32xf32>
    %cst_16 = arith.constant 1.000000e+00 : f32
    %27 = vector.broadcast %cst_16 : f32 to vector<48x32xf32>
    %28 = arith.subf %26, %27 : vector<48x32xf32>
    %cst_17 = arith.constant 1.67326319 : f32
    %29 = vector.broadcast %cst_17 : f32 to vector<48x32xf32>
    %30 = arith.mulf %29, %28 : vector<48x32xf32>
    %31 = arith.select %25, %23, %30 : vector<48x32xi1>, vector<48x32xf32>
    %cst_18 = arith.constant 1.05070102 : f32
    %32 = vector.broadcast %cst_18 : f32 to vector<48x32xf32>
    %33 = arith.mulf %32, %31 : vector<48x32xf32>
    %34 = vector.extract_strided_slice %1 {offsets = [0, 0], sizes = [16, 32], strides = [1, 1]} : vector<48x32xf32> to vector<16x32xf32>
    %35 = vector.shape_cast %34 : vector<16x32xf32> to vector<2x8x32xf32>
    %36 = vector.extract_strided_slice %1 {offsets = [16, 0], sizes = [32, 32], strides = [1, 1]} : vector<48x32xf32> to vector<32x32xf32>
    %37 = vector.shape_cast %36 : vector<32x32xf32> to vector<2x16x32xf32>
    %38 = vector.extract_strided_slice %33 {offsets = [0, 0], sizes = [16, 32], strides = [1, 1]} : vector<48x32xf32> to vector<16x32xf32>
    %39 = vector.shape_cast %38 : vector<16x32xf32> to vector<2x8x32xf32>
    %40 = vector.extract_strided_slice %33 {offsets = [16, 0], sizes = [32, 32], strides = [1, 1]} : vector<48x32xf32> to vector<32x32xf32>
    %41 = vector.shape_cast %40 : vector<32x32xf32> to vector<2x16x32xf32>
    "tpu.trace_start"() <{level = 10 : i32, message = "bpf,bqf->bpq"}> : () -> ()
    %cst_19 = arith.constant dense<0.000000e+00> : vector<2x8x16xf32>
    %42 = tpu.matmul %39, %41, %cst_19 {dimension_numbers = #tpu.dot_dimension_numbers<[2], [2], [1], [1], [0, 0, 0, 1, 1, 1], [0], [0]>} : vector<2x8x32xf32>, vector<2x16x32xf32>, vector<2x8x16xf32> -> vector<2x8x16xf32>
    "tpu.trace_stop"() : () -> ()
    %cst_20 = arith.constant dense<0xFF800000> : vector<8x16xf32>
    %43 = vector.multi_reduction <maximumf>, %42, %cst_20 [0] : vector<2x8x16xf32> to vector<8x16xf32>
    %44 = vector.shape_cast %43 : vector<8x16xf32> to vector<1x8x16xf32>
    %45 = vector.broadcast %44 : vector<1x8x16xf32> to vector<2x8x16xf32>
    %46 = arith.subf %42, %45 : vector<2x8x16xf32>
    %47 = math.exp %46 : vector<2x8x16xf32>
    %cst_21 = arith.constant dense<0.000000e+00> : vector<8x16xf32>
    %48 = vector.multi_reduction <add>, %47, %cst_21 [0] : vector<2x8x16xf32> to vector<8x16xf32>
    %49 = vector.shape_cast %48 : vector<8x16xf32> to vector<1x8x16xf32>
    %50 = vector.broadcast %49 : vector<1x8x16xf32> to vector<2x8x16xf32>
    %51 = arith.divf %47, %50 : vector<2x8x16xf32>
    "tpu.trace_start"() <{level = 10 : i32, message = "bpq,bqd->bpd"}> : () -> ()
    %cst_22 = arith.constant dense<0.000000e+00> : vector<2x8x32xf32>
    %52 = tpu.matmul %51, %37, %cst_22 {dimension_numbers = #tpu.dot_dimension_numbers<[2], [1], [1], [2], [0, 0, 0, 1, 1, 2], [0], [0]>} : vector<2x8x16xf32>, vector<2x16x32xf32>, vector<2x8x32xf32> -> vector<2x8x32xf32>
    "tpu.trace_stop"() : () -> ()
    "tpu.trace_start"() <{level = 10 : i32, message = "bpq,bpd->bqd"}> : () -> ()
    %cst_23 = arith.constant dense<0.000000e+00> : vector<2x16x32xf32>
    %53 = tpu.matmul %51, %35, %cst_23 {dimension_numbers = #tpu.dot_dimension_numbers<[1], [1], [2], [2], [0, 0, 0, 2, 1, 2], [0], [0]>} : vector<2x8x16xf32>, vector<2x8x32xf32>, vector<2x16x32xf32> -> vector<2x16x32xf32>
    "tpu.trace_stop"() : () -> ()
    %54 = vector.shape_cast %52 : vector<2x8x32xf32> to vector<16x32xf32>
    %55 = vector.shape_cast %53 : vector<2x16x32xf32> to vector<32x32xf32>
    %56 = tpu.concatenate %54, %55 in 0 : vector<16x32xf32>, vector<32x32xf32> -> vector<48x32xf32>
    %c0_24 = arith.constant 0 : index
    %c0_25 = arith.constant 0 : index
    %57 = vector.load %arg7[%c0_24, %c0_25] : memref<32x32xf32, #tpu.memory_space<vmem>>, vector<32x32xf32>
    %cst_26 = arith.constant dense<0.000000e+00> : vector<48x32xf32>
    %58 = tpu.matmul %56, %57, %cst_26 {dimension_numbers = #tpu.dot_dimension_numbers<[1], [0], [0], [1], [0, 0, 1, 1], [], []>} : vector<48x32xf32>, vector<32x32xf32>, vector<48x32xf32> -> vector<48x32xf32>
    %59 = arith.addf %18, %58 : vector<48x32xf32>
    %c0_27 = arith.constant 0 : index
    %c0_28 = arith.constant 0 : index
    %60 = vector.load %arg8[%c0_27, %c0_28] : memref<1x32xf32, #tpu.memory_space<vmem>>, vector<1x32xf32>
    %61 = vector.broadcast %60 : vector<1x32xf32> to vector<48x32xf32>
    %62 = arith.addf %59, %61 : vector<48x32xf32>
    %cst_29 = arith.constant 0.000000e+00 : f32
    %63 = vector.broadcast %cst_29 : f32 to vector<48x32xf32>
    %64 = arith.cmpf ogt, %62, %63 : vector<48x32xf32>
    %65 = math.exp %62 : vector<48x32xf32>
    %cst_30 = arith.constant 1.000000e+00 : f32
    %66 = vector.broadcast %cst_30 : f32 to vector<48x32xf32>
    %67 = arith.subf %65, %66 : vector<48x32xf32>
    %cst_31 = arith.constant 1.67326319 : f32
    %68 = vector.broadcast %cst_31 : f32 to vector<48x32xf32>
    %69 = arith.mulf %68, %67 : vector<48x32xf32>
    %70 = arith.select %64, %62, %69 : vector<48x32xi1>, vector<48x32xf32>
    %cst_32 = arith.constant 1.05070102 : f32
    %71 = vector.broadcast %cst_32 : f32 to vector<48x32xf32>
    %72 = arith.mulf %71, %70 : vector<48x32xf32>
    %c0_33 = arith.constant 0 : index
    %c0_34 = arith.constant 0 : index
    %73 = vector.load %arg9[%c0_33, %c0_34] : memref<32x32xf32, #tpu.memory_space<vmem>>, vector<32x32xf32>
    %cst_35 = arith.constant dense<0.000000e+00> : vector<48x32xf32>
    %74 = tpu.matmul %72, %73, %cst_35 {dimension_numbers = #tpu.dot_dimension_numbers<[1], [0], [0], [1], [0, 0, 1, 1], [], []>} : vector<48x32xf32>, vector<32x32xf32>, vector<48x32xf32> -> vector<48x32xf32>
    %c0_36 = arith.constant 0 : index
    %c0_37 = arith.constant 0 : index
    %75 = vector.load %arg10[%c0_36, %c0_37] : memref<1x32xf32, #tpu.memory_space<vmem>>, vector<1x32xf32>
    %76 = vector.broadcast %75 : vector<1x32xf32> to vector<48x32xf32>
    %77 = arith.addf %74, %76 : vector<48x32xf32>
    %cst_38 = arith.constant 0.000000e+00 : f32
    %78 = vector.broadcast %cst_38 : f32 to vector<48x32xf32>
    %79 = arith.cmpf ogt, %77, %78 : vector<48x32xf32>
    %80 = math.exp %77 : vector<48x32xf32>
    %cst_39 = arith.constant 1.000000e+00 : f32
    %81 = vector.broadcast %cst_39 : f32 to vector<48x32xf32>
    %82 = arith.subf %80, %81 : vector<48x32xf32>
    %cst_40 = arith.constant 1.67326319 : f32
    %83 = vector.broadcast %cst_40 : f32 to vector<48x32xf32>
    %84 = arith.mulf %83, %82 : vector<48x32xf32>
    %85 = arith.select %79, %77, %84 : vector<48x32xi1>, vector<48x32xf32>
    %cst_41 = arith.constant 1.05070102 : f32
    %86 = vector.broadcast %cst_41 : f32 to vector<48x32xf32>
    %87 = arith.mulf %86, %85 : vector<48x32xf32>
    %c0_42 = arith.constant 0 : index
    %c0_43 = arith.constant 0 : index
    %88 = vector.load %arg2[%c0_42, %c0_43] : memref<4x48xf32, #tpu.memory_space<vmem>>, vector<4x48xf32>
    %cst_44 = arith.constant dense<0.000000e+00> : vector<4x32xf32>
    %89 = tpu.matmul %88, %87, %cst_44 {dimension_numbers = #tpu.dot_dimension_numbers<[1], [0], [0], [1], [0, 0, 1, 1], [], []>} : vector<4x48xf32>, vector<48x32xf32>, vector<4x32xf32> -> vector<4x32xf32>
    %90 = vector.extract_strided_slice %89 {offsets = [0, 0], sizes = [2, 32], strides = [1, 1]} : vector<4x32xf32> to vector<2x32xf32>
    %91 = vector.extract_strided_slice %89 {offsets = [2, 0], sizes = [2, 32], strides = [1, 1]} : vector<4x32xf32> to vector<2x32xf32>
    %92 = tpu.concatenate %90, %91 in 1 : vector<2x32xf32>, vector<2x32xf32> -> vector<2x64xf32>
    %c0_45 = arith.constant 0 : index
    %c0_46 = arith.constant 0 : index
    %93 = vector.load %arg11[%c0_45, %c0_46] : memref<64x32xf32, #tpu.memory_space<vmem>>, vector<64x32xf32>
    %cst_47 = arith.constant dense<0.000000e+00> : vector<2x32xf32>
    %94 = tpu.matmul %92, %93, %cst_47 {dimension_numbers = #tpu.dot_dimension_numbers<[1], [0], [0], [1], [0, 0, 1, 1], [], []>} : vector<2x64xf32>, vector<64x32xf32>, vector<2x32xf32> -> vector<2x32xf32>
    %c0_48 = arith.constant 0 : index
    %c0_49 = arith.constant 0 : index
    %95 = vector.load %arg12[%c0_48, %c0_49] : memref<1x32xf32, #tpu.memory_space<vmem>>, vector<1x32xf32>
    %96 = vector.broadcast %95 : vector<1x32xf32> to vector<2x32xf32>
    %97 = arith.addf %94, %96 : vector<2x32xf32>
    %cst_50 = arith.constant 0.000000e+00 : f32
    %98 = vector.broadcast %cst_50 : f32 to vector<2x32xf32>
    %99 = arith.cmpf ogt, %97, %98 : vector<2x32xf32>
    %100 = math.exp %97 : vector<2x32xf32>
    %cst_51 = arith.constant 1.000000e+00 : f32
    %101 = vector.broadcast %cst_51 : f32 to vector<2x32xf32>
    %102 = arith.subf %100, %101 : vector<2x32xf32>
    %cst_52 = arith.constant 1.67326319 : f32
    %103 = vector.broadcast %cst_52 : f32 to vector<2x32xf32>
    %104 = arith.mulf %103, %102 : vector<2x32xf32>
    %105 = arith.select %99, %97, %104 : vector<2x32xi1>, vector<2x32xf32>
    %cst_53 = arith.constant 1.05070102 : f32
    %106 = vector.broadcast %cst_53 : f32 to vector<2x32xf32>
    %107 = arith.mulf %106, %105 : vector<2x32xf32>
    %c0_54 = arith.constant 0 : index
    %c0_55 = arith.constant 0 : index
    %108 = vector.load %arg13[%c0_54, %c0_55] : memref<32x4xf32, #tpu.memory_space<vmem>>, vector<32x4xf32>
    %cst_56 = arith.constant dense<0.000000e+00> : vector<2x4xf32>
    %109 = tpu.matmul %107, %108, %cst_56 {dimension_numbers = #tpu.dot_dimension_numbers<[1], [0], [0], [1], [0, 0, 1, 1], [], []>} : vector<2x32xf32>, vector<32x4xf32>, vector<2x4xf32> -> vector<2x4xf32>
    %c0_57 = arith.constant 0 : index
    %c0_58 = arith.constant 0 : index
    %110 = vector.load %arg14[%c0_57, %c0_58] : memref<1x4xf32, #tpu.memory_space<vmem>>, vector<1x4xf32>
    %111 = vector.broadcast %110 : vector<1x4xf32> to vector<2x4xf32>
    %112 = arith.addf %109, %111 : vector<2x4xf32>
    %cst_59 = arith.constant 0.000000e+00 : f32
    %113 = vector.broadcast %cst_59 : f32 to vector<2x4xf32>
    %114 = arith.cmpf ogt, %112, %113 : vector<2x4xf32>
    %115 = math.exp %112 : vector<2x4xf32>
    %cst_60 = arith.constant 1.000000e+00 : f32
    %116 = vector.broadcast %cst_60 : f32 to vector<2x4xf32>
    %117 = arith.subf %115, %116 : vector<2x4xf32>
    %cst_61 = arith.constant 1.67326319 : f32
    %118 = vector.broadcast %cst_61 : f32 to vector<2x4xf32>
    %119 = arith.mulf %118, %117 : vector<2x4xf32>
    %120 = arith.select %114, %112, %119 : vector<2x4xi1>, vector<2x4xf32>
    %cst_62 = arith.constant 1.05070102 : f32
    %121 = vector.broadcast %cst_62 : f32 to vector<2x4xf32>
    %122 = arith.mulf %121, %120 : vector<2x4xf32>
    %cst_63 = arith.constant dense<0xFF800000> : vector<2xf32>
    %123 = vector.multi_reduction <maximumf>, %122, %cst_63 [1] : vector<2x4xf32> to vector<2xf32>
    %124 = vector.shape_cast %123 : vector<2xf32> to vector<2x1xf32>
    %125 = vector.broadcast %124 : vector<2x1xf32> to vector<2x4xf32>
    %126 = arith.subf %122, %125 : vector<2x4xf32>
    %127 = math.exp %126 : vector<2x4xf32>
    %cst_64 = arith.constant dense<0.000000e+00> : vector<2xf32>
    %128 = vector.multi_reduction <add>, %127, %cst_64 [1] : vector<2x4xf32> to vector<2xf32>
    %129 = vector.shape_cast %128 : vector<2xf32> to vector<2x1xf32>
    %130 = vector.broadcast %129 : vector<2x1xf32> to vector<2x4xf32>
    %131 = arith.divf %127, %130 : vector<2x4xf32>
    %c0_65 = arith.constant 0 : index
    %c0_66 = arith.constant 0 : index
    %c0_67 = arith.constant 0 : index
    %132 = vector.load %arg15[%c0_65, %c0_66, %c0_67] : memref<1x2x4xf32, #tpu.memory_space<vmem>>, vector<1x2x4xf32>
    %133 = vector.shape_cast %132 : vector<1x2x4xf32> to vector<2x4xf32>
    %134 = vector.shape_cast %131 : vector<2x4xf32> to vector<1x2x4xf32>
    tpu.vector_store %arg15[%c0_65, %c0_66, %c0_67], %134 {strides = array<i32>} : memref<1x2x4xf32, #tpu.memory_space<vmem>>, vector<1x2x4xf32>,
    return
  }
  func.func @transform_0(%arg0: i32) -> (i32, i32, i32) {
    %c0_i32 = arith.constant 0 : i32
    %c0_i32_0 = arith.constant 0 : i32
    %c0_i32_1 = arith.constant 0 : i32
    return %arg0, %c0_i32, %c0_i32_0 : i32, i32, i32
  }
  func.func @transform_1(%arg0: i32) -> (i32, i32) {
    %c0_i32 = arith.constant 0 : i32
    %c0_i32_0 = arith.constant 0 : i32
    %c0_i32_1 = arith.constant 0 : i32
    return %c0_i32, %c0_i32_0 : i32, i32
  }
  func.func @transform_2(%arg0: i32) -> (i32, i32) {
    %c0_i32 = arith.constant 0 : i32
    %c0_i32_0 = arith.constant 0 : i32
    %c0_i32_1 = arith.constant 0 : i32
    return %c0_i32, %c0_i32_0 : i32, i32
  }
  func.func @transform_3(%arg0: i32) -> (i32, i32) {
    %c0_i32 = arith.constant 0 : i32
    %c0_i32_0 = arith.constant 0 : i32
    %c0_i32_1 = arith.constant 0 : i32
    return %c0_i32, %c0_i32_0 : i32, i32
  }
  func.func @transform_4(%arg0: i32) -> (i32, i32) {
    %c0_i32 = arith.constant 0 : i32
    %c0_i32_0 = arith.constant 0 : i32
    %c0_i32_1 = arith.constant 0 : i32
    return %c0_i32, %c0_i32_0 : i32, i32
  }
  func.func @transform_5(%arg0: i32) -> (i32, i32) {
    %c0_i32 = arith.constant 0 : i32
    %c0_i32_0 = arith.constant 0 : i32
    %c0_i32_1 = arith.constant 0 : i32
    return %c0_i32, %c0_i32_0 : i32, i32
  }
  func.func @transform_6(%arg0: i32) -> (i32, i32) {
    %c0_i32 = arith.constant 0 : i32
    %c0_i32_0 = arith.constant 0 : i32
    %c0_i32_1 = arith.constant 0 : i32
    return %c0_i32, %c0_i32_0 : i32, i32
  }
  func.func @transform_7(%arg0: i32) -> (i32, i32) {
    %c0_i32 = arith.constant 0 : i32
    %c0_i32_0 = arith.constant 0 : i32
    %c0_i32_1 = arith.constant 0 : i32
    return %c0_i32, %c0_i32_0 : i32, i32
  }
  func.func @transform_8(%arg0: i32) -> (i32, i32) {
    %c0_i32 = arith.constant 0 : i32
    %c0_i32_0 = arith.constant 0 : i32
    %c0_i32_1 = arith.constant 0 : i32
    return %c0_i32, %c0_i32_0 : i32, i32
  }
  func.func @transform_9(%arg0: i32) -> (i32, i32) {
    %c0_i32 = arith.constant 0 : i32
    %c0_i32_0 = arith.constant 0 : i32
    %c0_i32_1 = arith.constant 0 : i32
    return %c0_i32, %c0_i32_0 : i32, i32
  }
  func.func @transform_10(%arg0: i32) -> (i32, i32) {
    %c0_i32 = arith.constant 0 : i32
    %c0_i32_0 = arith.constant 0 : i32
    %c0_i32_1 = arith.constant 0 : i32
    return %c0_i32, %c0_i32_0 : i32, i32
  }
  func.func @transform_11(%arg0: i32) -> (i32, i32) {
    %c0_i32 = arith.constant 0 : i32
    %c0_i32_0 = arith.constant 0 : i32
    %c0_i32_1 = arith.constant 0 : i32
    return %c0_i32, %c0_i32_0 : i32, i32
  }
  func.func @transform_12(%arg0: i32) -> (i32, i32) {
    %c0_i32 = arith.constant 0 : i32
    %c0_i32_0 = arith.constant 0 : i32
    %c0_i32_1 = arith.constant 0 : i32
    return %c0_i32, %c0_i32_0 : i32, i32
  }
  func.func @transform_13(%arg0: i32) -> (i32, i32) {
    %c0_i32 = arith.constant 0 : i32
    %c0_i32_0 = arith.constant 0 : i32
    %c0_i32_1 = arith.constant 0 : i32
    return %c0_i32, %c0_i32_0 : i32, i32
  }
  func.func @transform_14(%arg0: i32) -> (i32, i32, i32) {
    %c0_i32 = arith.constant 0 : i32
    %c0_i32_0 = arith.constant 0 : i32
    %c0_i32_1 = arith.constant 0 : i32
    return %arg0, %c0_i32, %c0_i32_0 : i32, i32, i32
  }
}

</mosaic_0001>

<bundles_post_ra>
// kernel: tpu_custom_call.1
= control target key start
LH: loop header
LB: loop body
LE: loop exit
PB: predicated region body
PF: predicated region fallthrough
CT: control target
= control target key end

     0   :  { %vm58_vm0 = vcmask 261120   ;;  %s2370_s0 = inlined_call_operand.vmem [shape: f32[1,48,32], index: 0, kind: input, shape index: {}]   ;;  %s2371_s1 = inlined_call_operand.vmem [shape: f32[4,48], index: 1, kind: input, shape index: {}]   ;;  %s2372_s2 = inlined_call_operand.vmem [shape: f32[32,64], index: 2, kind: input, shape index: {}]   ;;  %s2373_s3 = inlined_call_operand.vmem [shape: f32[1,32], index: 3, kind: input, shape index: {}]   ;;  %s2374_s4 = inlined_call_operand.vmem [shape: f32[32,32], index: 4, kind: input, shape index: {}]   ;;  %s2375_s5 = inlined_call_operand.vmem [shape: f32[1,32], index: 5, kind: input, shape index: {}]   ;;  %s2376_s6 = inlined_call_operand.vmem [shape: f32[32,32], index: 6, kind: input, shape index: {}]   ;;  %s2377_s7 = inlined_call_operand.vmem [shape: f32[1,32], index: 7, kind: input, shape index: {}]   ;;  %s2378_s8 = inlined_call_operand.vmem [shape: f32[32,32], index: 8, kind: input, shape index: {}]   ;;  %s2379_s9 = inlined_call_operand.vmem [shape: f32[1,32], index: 9, kind: input, shape index: {}]   ;;  %s2380_s10 = inlined_call_operand.vmem [shape: f32[64,32], index: 10, kind: input, shape index: {}]   ;;  %s2381_s11 = inlined_call_operand.vmem [shape: f32[1,32], index: 11, kind: input, shape index: {}]   ;;  %s2382_s12 = inlined_call_operand.vmem [shape: f32[32,4], index: 12, kind: input, shape index: {}]   ;;  %s2383_s13 = inlined_call_operand.vmem [shape: f32[1,4], index: 13, kind: input, shape index: {}]   ;;  %s2384_s14 = inlined_call_operand.hbm [shape: f32[1,2,4], index: 14, kind: output, shape index: {}]  }
   0x1   :  { %v57_v0 = vld [vmem:[%s2372_s2 + $0x18] sm:$0xff]  ;;  %v56_v1 = vld [vmem:[%s2372_s2 + $0x10] sm:$0xff]  ;;  %v2096_v2 = vld [vmem:[%s2370_s0] sm:$0xff] }
   0x2   :  { %1767 = vmatprep.subr.mxu0 %v57_v0  ;;  %v55_v3 = vld [vmem:[%s2372_s2 + $0x8] sm:$0xff]  ;;  %1775 = vmatprep.mubr.msk.f32.mxu0 %vm58_vm0, %v2096_v2 }
   0x3   :  { %1768 = vmatpush3.msra.mxu0 %v57_v0 }
   0x4   :  { %1769 = vmatprep.subr.mxu0 %v56_v1 }
   0x5   :  { %19 = vsyncpa [#allocation3], 0  ;;  %1770 = vmatpush3.msra.mxu0 %v56_v1  ;;  %v54_v4 = vld [vmem:[%s2372_s2] sm:$0xff]  ;;  %v2109_v5 = vld [vmem:[%s2370_s0 + $0x8] sm:$0xff]  ;;  %v2007_v63 = vmov 0.0   ;;  %vm2008_vm7 = vmmov 0  }
   0x6   :  { %1771 = vmatprep.subr.mxu0 %v55_v3  ;;  %v2114_v6 = vld [vmem:[%s2370_s0 + $0x10] sm:$0xff]  ;;  %v2123_v7 = vld [vmem:[%s2370_s0 + $0x18] sm:$0xff]  ;;  %v2128_v8 = vld [vmem:[%s2370_s0 + $0x20] sm:$0xff]  ;;  %vm551_vm14 = vcmask 130048   ;;  %vm745_vm15 = vcmask 64512   ;;  %s2009_s16 = smov 32  }
   0x7   :  { %1772 = vmatpush3.msra.mxu0 %v55_v3  ;;  %v2137_v9 = vld [vmem:[%s2370_s0 + $0x28] sm:$0xff]  ;;  %v230_v10 = vld [vmem:[%s2374_s4 + $0x18] sm:$0xff]  ;;  %v229_v11 = vld [vmem:[%s2374_s4 + $0x10] sm:$0xff] }
   0x8   :  { %1773 = vmatprep.subr.mxu0 %v54_v4  ;;  %1784 = vmatprep.subr.mxu1 %v230_v10  ;;  %v228_v12 = vld [vmem:[%s2374_s4 + $0x8] sm:$0xff]  ;;  %v227_v13 = vld [vmem:[%s2374_s4] sm:$0xff] }
   0x9   :  { %1774 = vmatpush3.msra.mxu0 %v54_v4  ;;  %1785 = vmatpush3.msra.mxu1 %v230_v10  ;;  %v1623_v14 = vld [vmem:[%s2373_s3] ss:$0 sm:$0xff] }
   0xa   :  { %1776 = vmatmul.mubr.msk.f32.vlgmr.msra.gmra.mxu0 %vm58_vm0, %v2109_v5  ;;  %1786 = vmatprep.subr.mxu1 %v229_v11  ;;  %v1630_v1 = vld [vmem:[%s2375_s5] ss:$0 sm:$0xff] }
   0xb   :  { %1778 = vmatprep.mubr.msk.f32.mxu0 %vm58_vm0, %v2114_v6  ;;  %1787 = vmatpush3.msra.mxu1 %v229_v11 }
   0xc   :  { %1788 = vmatprep.subr.mxu1 %v228_v12  ;;  %1801 = vmatprep.subr.mxu0 %v2007_v63 }
   0xd   :  { %1789 = vmatpush3.msra.mxu1 %v228_v12 }
   0xe   :  { %1779 = vmatmul.mubr.msk.f32.gmra.mxu0 %vm58_vm0, %v2123_v7  ;;  %1790 = vmatprep.subr.mxu1 %v227_v13 }
   0xf   :  { %1781 = vmatprep.mubr.msk.f32.mxu0 %vm58_vm0, %v2128_v8  ;;  %1791 = vmatpush3.msra.mxu1 %v227_v13 }
  0x10   :  { %1808 = vmatprep.subr.mxu1 %v2007_v63 }
  0x12   :  { %1782 = vmatmul.mubr.msk.f32.gmra.mxu0 %vm58_vm0, %v2137_v9 }
  0x13   :  { %1805 = vmatprep.mubr.msk.f32.mxu0 %vm2008_vm7, %v2007_v63 }
  0xca   :  { %v2156_v15 = vpop.f32.mrf.mxu0 }
  0xcb   :  { %v180_v16 = vadd.f32 %v2156_v15, %v1623_v14 }
  0xcc   :  { %v2159_v17 = vpop.f32.mrf.mxu0 }
  0xcd   :  { %v193_v18 = vmul.f32 1.442695, %v180_v16  ;;  %v179_v19 = vadd.f32 %v1623_v14, %v2159_v17  ;;  %vm186_vm1 = vcmp.gt.f32.partialorder %v180_v16, 0.0 }
  0xce   :  { %v2162_v20 = vpop.f32.mrf.mxu0 }
  0xcf   :  { %1923 = vpow2.f32 %v193_v18  ;;  %v191_v21 = vmul.f32 1.442695, %v179_v19  ;;  %v182_v22 = vadd.f32 %v2162_v20, %v1623_v14  ;;  %vm185_vm2 = vcmp.gt.f32.partialorder %v179_v19, 0.0 }
  0xd0   :  { %v2165_v23 = vpop.f32.mrf.mxu0 }
  0xd1   :  { %1925 = vpow2.f32 %v191_v21  ;;  %v197_v24 = vmul.f32 1.442695, %v182_v22  ;;  %v181_v25 = vadd.f32 %v1623_v14, %v2165_v23  ;;  %vm188_vm3 = vcmp.gt.f32.partialorder %v182_v22, 0.0 }
  0xd2   :  { %v2168_v26 = vpop.f32.mrf.mxu0 }
  0xd3   :  { %1927 = vpow2.f32 %v197_v24  ;;  %v195_v27 = vmul.f32 1.442695, %v181_v25  ;;  %v184_v28 = vadd.f32 %v2168_v26, %v1623_v14  ;;  %vm187_vm4 = vcmp.gt.f32.partialorder %v181_v25, 0.0 }
  0xd4   :  { %v2171_v29 = vpop.f32.mrf.mxu0 }
  0xd5   :  { %1929 = vpow2.f32 %v195_v27  ;;  %v201_v30 = vmul.f32 1.442695, %v184_v28  ;;  %v183_v31 = vadd.f32 %v1623_v14, %v2171_v29  ;;  %vm190_vm5 = vcmp.gt.f32.partialorder %v184_v28, 0.0 }
  0xd7   :  { %1931 = vpow2.f32 %v201_v30  ;;  %v199_v32 = vmul.f32 1.442695, %v183_v31  ;;  %vm189_vm6 = vcmp.gt.f32.partialorder %v183_v31, 0.0 }
  0xd9   :  { %1933 = vpow2.f32 %v199_v32 }
  0xdc   :  { %v1924_v33 = vpop.eup %1923 }
  0xdd   :  { %v1625_v34 = vadd.f32 -1.0, %v1924_v33 }
  0xde   :  { %v1926_v35 = vpop.eup %1925 }
  0xdf   :  { %v210_v36 = vmul.f32 1.6732632, %v1625_v34  ;;  %v1624_v37 = vadd.f32 -1.0, %v1926_v35 }
  0xe0   :  { %v1928_v38 = vpop.eup %1927 }
  0xe1   :  { %v1627_v39 = vadd.f32 -1.0, %v1928_v38  ;;  %v209_v40 = vmul.f32 1.6732632, %v1624_v37  ;;  %v216_v42 = vsel %vm186_vm1, %v180_v16, %v210_v36 }
  0xe2   :  { %v1930_v41 = vpop.eup %1929  ;;  %v222_v48 = vmul.f32 1.050701, %v216_v42 }
  0xe3   :  { %v212_v43 = vmul.f32 1.6732632, %v1627_v39  ;;  %v1626_v44 = vadd.f32 -1.0, %v1930_v41  ;;  %v215_v45 = vsel %vm185_vm2, %v179_v19, %v209_v40 }
  0xe4   :  { %v1932_v46 = vpop.eup %1931  ;;  %v221_v47 = vmul.f32 1.050701, %v215_v45 }
  0xe5   :  { %v211_v49 = vmul.f32 1.6732632, %v1626_v44  ;;  %v1629_v50 = vadd.f32 -1.0, %v1932_v46  ;;  %v218_v52 = vsel %vm188_vm3, %v182_v22, %v212_v43 }
  0xe6   :  { %v1934_v51 = vpop.eup %1933  ;;  %1792 = vmatprep.mubr.msk.f32.mxu1 %vm58_vm0, %v221_v47  ;;  %v224_v57 = vmul.f32 1.050701, %v218_v52 }
  0xe7   :  { %v217_v53 = vsel %vm187_vm4, %v181_v25, %v211_v49  ;;  %v214_v54 = vmul.f32 1.6732632, %v1629_v50  ;;  %v1628_v55 = vadd.f32 -1.0, %v1934_v51  ;;  %1793 = vmatmul.mubr.msk.f32.vlgmr.msra.gmra.mxu1 %vm58_vm0, %v222_v48 }
  0xe8   :  { %v223_v56 = vmul.f32 1.050701, %v217_v53 }
  0xe9   :  { %v213_v58 = vmul.f32 1.6732632, %v1628_v55  ;;  %v220_v59 = vsel %vm190_vm5, %v184_v28, %v214_v54 }
  0xea   :  { %1795 = vmatprep.mubr.msk.f32.mxu1 %vm58_vm0, %v223_v56  ;;  %v226_v62 = vmul.f32 1.050701, %v220_v59 }
  0xeb   :  { %v219_v60 = vsel %vm189_vm6, %v183_v31, %v213_v58  ;;  %1796 = vmatmul.mubr.msk.f32.gmra.mxu1 %vm58_vm0, %v224_v57 }
  0xec   :  { %v225_v61 = vmul.f32 1.050701, %v219_v60 }
  0xee   :  { %1798 = vmatprep.mubr.msk.f32.mxu1 %vm58_vm0, %v225_v61 }
  0xef   :  { %1799 = vmatmul.mubr.msk.f32.gmra.mxu1 %vm58_vm0, %v226_v62 }
  0xf0   :  { %1812 = vmatprep.mubr.msk.f32.mxu1 %vm2008_vm7, %v2007_v63 }
 0x1a7   :  { %v1794_v0 = vpop.f32.mrf.mxu1 }
 0x1a8   :  { %v328_v10 = vadd.f32 %v1794_v0, %v1630_v1 }
 0x1a9   :  { %v322_v3 = vpop.f32.mrf.mxu1 }
 0x1aa   :  { %v323_v4 = vadd.f32 %v1630_v1, %v322_v3  ;;  %v359_v19 = vmul.f32 1.442695, %v328_v10  ;;  %vm352_vm13 = vcmp.gt.f32.partialorder %v328_v10, 0.0 }
 0x1ab   :  { %v1797_v11 = vpop.f32.mrf.mxu1 }
 0x1ac   :  { %v357_v12 = vmul.f32 1.442695, %v323_v4  ;;  %v338_v13 = vadd.f32 %v1797_v11, %v1630_v1  ;;  %vm351_vm11 = vcmp.gt.f32.partialorder %v323_v4, 0.0 }
 0x1ad   :  { %v332_v14 = vpop.f32.mrf.mxu1 }
 0x1ae   :  { %v363_v16 = vmul.f32 1.442695, %v338_v13  ;;  %v333_v18 = vadd.f32 %v1630_v1, %v332_v14  ;;  %1935 = vpow2.f32 %v357_v12  ;;  %vm354_vm8 = vcmp.gt.f32.partialorder %v338_v13, 0.0 }
 0x1af   :  { %v1800_v21 = vpop.f32.mrf.mxu1 }
 0x1b0   :  { %1937 = vpow2.f32 %v363_v16  ;;  %v361_v22 = vmul.f32 1.442695, %v333_v18  ;;  %v348_v24 = vadd.f32 %v1800_v21, %v1630_v1  ;;  %vm353_vm9 = vcmp.gt.f32.partialorder %v333_v18, 0.0 }
 0x1b1   :  { %v342_v25 = vpop.f32.mrf.mxu1 }
 0x1b2   :  { %1939 = vpow2.f32 %v361_v22  ;;  %v367_v27 = vmul.f32 1.442695, %v348_v24  ;;  %v343_v28 = vadd.f32 %v1630_v1, %v342_v25  ;;  %vm356_vm10 = vcmp.gt.f32.partialorder %v348_v24, 0.0  ;;  %v943_v22 = vld [vmem:[%s2376_s6 + $0x18] sm:$0xff] }
 0x1b3   :  { %1941 = vpow2.f32 %v359_v19 }
 0x1b4   :  { %1943 = vpow2.f32 %v367_v27  ;;  %v365_v30 = vmul.f32 1.442695, %v343_v28  ;;  %vm355_vm12 = vcmp.gt.f32.partialorder %v343_v28, 0.0  ;;  %v942_v27 = vld [vmem:[%s2376_s6 + $0x10] sm:$0xff] }
 0x1b6   :  { %1945 = vpow2.f32 %v365_v30 }
 0x1bb   :  { %v1936_v31 = vpop.eup %1935 }
 0x1bc   :  { %v1637_v35 = vadd.f32 -1.0, %v1936_v31 }
 0x1bd   :  { %v1938_v32 = vpop.eup %1937 }
 0x1be   :  { %v1640_v33 = vadd.f32 -1.0, %v1938_v32  ;;  %v375_v45 = vmul.f32 1.6732632, %v1637_v35  ;;  %v1661_v35 = vld [vmem:[%s2377_s7] ss:$0 sm:$0xff] }
 0x1bf   :  { %v1940_v34 = vpop.eup %1939  ;;  %1093 = vrot.lane.b32.xlu1 %v1661_v35, %s2009_s16 }
 0x1c0   :  { %v1942_v36 = vpop.eup %1941  ;;  %v378_v37 = vmul.f32 1.6732632, %v1640_v33  ;;  %v1639_v38 = vadd.f32 -1.0, %v1940_v34  ;;  %v381_v53 = vsel %vm351_vm11, %v323_v4, %v375_v45 }
 0x1c1   :  { %v1944_v39 = vpop.eup %1943  ;;  %v1638_v44 = vadd.f32 -1.0, %v1942_v36  ;;  %v387_v57 = vmul.f32 1.050701, %v381_v53 }
 0x1c2   :  { %v384_v40 = vsel %vm354_vm8, %v338_v13, %v378_v37  ;;  %v377_v41 = vmul.f32 1.6732632, %v1639_v38  ;;  %v1642_v42 = vadd.f32 -1.0, %v1944_v39 }
 0x1c3   :  { %v1946_v43 = vpop.eup %1945  ;;  %v390_v46 = vmul.f32 1.050701, %v384_v40  ;;  %v376_v52 = vmul.f32 1.6732632, %v1638_v44 }
 0x1c4   :  { %v383_v47 = vsel %vm353_vm9, %v333_v18, %v377_v41  ;;  %v380_v48 = vmul.f32 1.6732632, %v1642_v42  ;;  %v1641_v49 = vadd.f32 -1.0, %v1946_v43 }
 0x1c5   :  { %1802 = vmatpush3.xpose.msk.msra.mxu0 %vm58_vm0, %v390_v46  ;;  %v389_v54 = vmul.f32 1.050701, %v383_v47  ;;  %v382_v58 = vsel %vm352_vm13, %v328_v10, %v376_v52 }
 0x1c6   :  { %v386_v50 = vsel %vm356_vm10, %v348_v24, %v380_v48  ;;  %v379_v51 = vmul.f32 1.6732632, %v1641_v49  ;;  %1803 = vmatprep.subr.mxu0 %v2007_v63  ;;  %v388_v60 = vmul.f32 1.050701, %v382_v58 }
 0x1c7   :  { %v392_v55 = vmul.f32 1.050701, %v386_v50 }
 0x1c8   :  { %v385_v56 = vsel %vm355_vm12, %v343_v28, %v379_v51  ;;  %v940_v28 = vld [vmem:[%s2376_s6] sm:$0xff] }
 0x1c9   :  { %1804 = vmatpush3.xpose.msk.msra.mxu0 %vm58_vm0, %v389_v54  ;;  %1809 = vmatpush3.xpose.msk.msra.mxu1 %vm58_vm0, %v392_v55  ;;  %v391_v59 = vmul.f32 1.050701, %v385_v56  ;;  %v1145_v55 = vld [vmem:[%s2378_s8 + $0x8] sm:$0xff] }
 0x1ca   :  { %1810 = vmatprep.subr.mxu1 %v2007_v63  ;;  %1815 = vmatprep.subr.mxu0 %v2007_v63 }
 0x1cc   :  { %1806 = vmatmul.mubr.msk.f32.vlgmr.msra.gmra.mxu0 %vm58_vm0, %v387_v57  ;;  %v1144_v57 = vld [vmem:[%s2378_s8] sm:$0xff] }
 0x1cd   :  { %1811 = vmatpush3.xpose.msk.msra.mxu1 %vm58_vm0, %v391_v59  ;;  %1816 = vmatpush3.msra.mxu0 %v2123_v7 }
 0x1ce   :  { %1822 = vmatprep.subr.mxu1 %v2007_v63  ;;  %1817 = vmatprep.subr.mxu0 %v2007_v63 }
 0x1cf   :  { %1818 = vmatpush3.msra.mxu0 %v2114_v6  ;;  %1819 = vmatprep.mubr.msk.f32.mxu0 %vm2008_vm7, %v2007_v63 }
 0x1d0   :  { %1813 = vmatmul.mubr.msk.f32.vlgmr.msra.gmra.mxu1 %vm58_vm0, %v388_v60  ;;  %1829 = vmatprep.subr.mxu0 %v2096_v2 }
 0x1d1   :  { %1823 = vmatpush3.msra.mxu1 %v2137_v9  ;;  %1826 = vmatprep.mubr.msk.f32.mxu1 %vm2008_vm7, %v2007_v63 }
 0x1d2   :  { %1824 = vmatprep.subr.mxu1 %v2007_v63 }
 0x1d3   :  { %1825 = vmatpush3.msra.mxu1 %v2128_v8 }
 0x1d4   :  { %1834 = vmatprep.subr.mxu1 %v2109_v5 }
 0x231   :  { %v2250_v42 = vpop.permute.xlu1 %1093 }
 0x28c   :  { %v468_v7 = vpop.f32.mrf.mxu0 }
 0x28d   :  { %v552_v62 = vsel %vm551_vm14, %v468_v7, -inf }
 0x28e   :  { %v1807_v6 = vpop.f32.mrf.mxu0 }
 0x290   :  { %v547_v61 = vpop.f32.mrf.mxu1 }
 0x291   :  { %v553_v0 = vsel %vm551_vm14, %v547_v61, -inf }
 0x292   :  { %v554_v1 = vmax.f32 %v552_v62, %v553_v0  ;;  %v1814_v3 = vpop.f32.mrf.mxu1 }
 0x294   :  { %v555_v9 = vsub.f32 %v468_v7, %v554_v1  ;;  %v556_v4 = vsub.f32 %v547_v61, %v554_v1 }
 0x296   :  { %v557_v10 = vmul.f32 1.442695, %v555_v9  ;;  %v559_v11 = vmul.f32 1.442695, %v556_v4 }
 0x298   :  { %1947 = vpow2.f32 %v557_v10 }
 0x299   :  { %1949 = vpow2.f32 %v559_v11 }
 0x2a5   :  { %v1948_v12 = vpop.eup %1947 }
 0x2a6   :  { %v1950_v8 = vpop.eup %1949  ;;  %v561_v13 = vsel %vm551_vm14, %v1948_v12, 0.0 }
 0x2a7   :  { %v562_v14 = vsel %vm551_vm14, %v1950_v8, 0.0 }
 0x2a8   :  { %v563_v16 = vadd.f32 %v562_v14, %v561_v13 }
 0x2aa   :  { %1951 = vrcp.f32 %v563_v16 }
 0x2b7   :  { %v1952_v18 = vpop.eup %1951 }
 0x2b8   :  { %v566_v19 = vmul.f32 %v1952_v18, %v1950_v8  ;;  %v565_v21 = vmul.f32 %v1952_v18, %v1948_v12 }
 0x2ba   :  { %1827 = vmatmul.mubr.msk.f32.vlgmr.msra.gmra.mxu1 %vm551_vm14, %v566_v19  ;;  %713 = vxpose.xlu0.b32.start.end [1/1] (short) (narrow) %v565_v21, 16 }
 0x2bb   :  { %1820 = vmatmul.mubr.msk.f32.vlgmr.msra.gmra.mxu0 %vm551_vm14, %v565_v21  ;;  %1835 = vmatpush3.msra.mxu1 %v2109_v5  ;;  %vm1323_vm14 = vcmask 392192  }
 0x2bc   :  { %1830 = vmatpush3.msra.mxu0 %v2096_v2  ;;  %v941_v2 = vld [vmem:[%s2376_s6 + $0x8] sm:$0xff] }
 0x2bd   :  { %1839 = vmatprep.subr.mxu0 %v943_v22 }
 0x2bf   :  { %827 = vxpose.xlu0.b32.start.end [1/1] (short) (narrow) %v566_v19, 16 }
 0x336   :  { %v729_v24 = vpop.trf.xlu0 }
 0x337   :  { %1831 = vmatprep.mubr.msk.f32.mxu0 %vm745_vm15, %v729_v24 }
 0x33a   :  { %v730_v25 = vpop.trf.xlu0 }
 0x33b   :  { %1832 = vmatmul.mubr.msk.f32.vlgmr.msra.gmra.mxu0 %vm745_vm15, %v730_v25 }
 0x33c   :  { %1840 = vmatpush3.msra.mxu0 %v943_v22 }
 0x33d   :  { %1841 = vmatprep.subr.mxu0 %v942_v27 }
 0x33e   :  { %v843_v5 = vpop.trf.xlu0  ;;  %1842 = vmatpush3.msra.mxu0 %v942_v27 }
 0x33f   :  { %1836 = vmatprep.mubr.msk.f32.mxu1 %vm745_vm15, %v843_v5  ;;  %1843 = vmatprep.subr.mxu0 %v941_v2 }
 0x340   :  { %1844 = vmatpush3.msra.mxu0 %v941_v2 }
 0x341   :  { %1845 = vmatprep.subr.mxu0 %v940_v28 }
 0x342   :  { %v844_v30 = vpop.trf.xlu0  ;;  %1846 = vmatpush3.msra.mxu0 %v940_v28 }
 0x343   :  { %1837 = vmatmul.mubr.msk.f32.vlgmr.msra.gmra.mxu1 %vm745_vm15, %v844_v30  ;;  %1873 = vmatprep.subr.mxu0 %v2007_v63 }
 0x37a   :  { %v709_v31 = vpop.f32.mrf.mxu1 }
 0x37b   :  { %v636_v32 = vpop.f32.mrf.mxu0 }
 0x37c   :  { %1847 = vmatprep.mubr.msk.f32.mxu0 %vm58_vm0, %v636_v32  ;;  %v1828_v33 = vpop.f32.mrf.mxu1 }
 0x37d   :  { %v1821_v34 = vpop.f32.mrf.mxu0  ;;  %1848 = vmatmul.mubr.msk.f32.vlgmr.msra.gmra.mxu0 %vm58_vm0, %v709_v31 }
 0x3fb   :  { %v1833_v36 = vpop.f32.mrf.mxu0 }
 0x3fd   :  { %v818_v37 = vpop.f32.mrf.mxu0 }
 0x3fe   :  { %1850 = vmatprep.mubr.msk.f32.mxu0 %vm58_vm0, %v818_v37 }
 0x3ff   :  { %1851 = vmatmul.mubr.msk.f32.gmra.mxu0 %vm58_vm0, %v1833_v36 }
 0x403   :  { %v1838_v38 = vpop.f32.mrf.mxu1 }
 0x405   :  { %v931_v39 = vpop.f32.mrf.mxu1 }
 0x406   :  { %1853 = vmatprep.mubr.msk.f32.mxu0 %vm58_vm0, %v931_v39 }
 0x407   :  { %1854 = vmatmul.mubr.msk.f32.gmra.mxu0 %vm58_vm0, %v1838_v38 }
 0x408   :  { %1885 = vmatprep.mubr.msk.f32.mxu0 %vm2008_vm7, %v2007_v63 }
 0x43d   :  { %v1849_v40 = vpop.f32.mrf.mxu0 }
 0x43e   :  { %1065 = vrot.lane.b32.xlu1 %v1849_v40, %s2009_s16 }
 0x43f   :  { %v1028_v41 = vpop.f32.mrf.mxu0 }
 0x442   :  { %1063 = vrot.lane.b32.xlu1 %v1028_v41, %s2009_s16 }
 0x4b0   :  { %v1066_v43 = vpop.permute.xlu1 %1065 }
 0x4b1   :  { %v1082_v44 = vadd.f32 %v2156_v15, %v1066_v43  ;;  %v1147_v15 = vld [vmem:[%s2378_s8 + $0x18] sm:$0xff] }
 0x4b2   :  { %1856 = vmatprep.subr.mxu1 %v1147_v15 }
 0x4b3   :  { %v1097_v45 = vadd.f32 %v2250_v42, %v1082_v44  ;;  %1857 = vmatpush3.msra.mxu1 %v1147_v15 }
 0x4b4   :  { %v1064_v46 = vpop.permute.xlu1 %1063 }
 0x4b5   :  { %v1110_v47 = vmul.f32 1.442695, %v1097_v45  ;;  %v1081_v48 = vadd.f32 %v1064_v46, %v2159_v17  ;;  %v1146_v17 = vld [vmem:[%s2378_s8 + $0x10] sm:$0xff]  ;;  %vm1103_vm1 = vcmp.gt.f32.partialorder %v1097_v45, 0.0  ;;  %s2010_s8 = smov 96  }
 0x4b6   :  { %1858 = vmatprep.subr.mxu1 %v1146_v17 }
 0x4b7   :  { %1953 = vpow2.f32 %v1110_v47  ;;  %v1096_v49 = vadd.f32 %v2250_v42, %v1081_v48  ;;  %1859 = vmatpush3.msra.mxu1 %v1146_v17 }
 0x4b8   :  { %1860 = vmatprep.subr.mxu1 %v1145_v55 }
 0x4b9   :  { %v1108_v50 = vmul.f32 1.442695, %v1096_v49  ;;  %1861 = vmatpush3.msra.mxu1 %v1145_v55  ;;  %vm1102_vm2 = vcmp.gt.f32.partialorder %v1096_v49, 0.0 }
 0x4ba   :  { %1862 = vmatprep.subr.mxu1 %v1144_v57 }
 0x4bb   :  { %1955 = vpow2.f32 %v1108_v50  ;;  %1863 = vmatpush3.msra.mxu1 %v1144_v57 }
 0x4bc   :  { %1888 = vmatprep.subr.mxu1 %v2007_v63 }
 0x4bf   :  { %v1852_v51 = vpop.f32.mrf.mxu0 }
 0x4c0   :  { %1069 = vrot.lane.b32.xlu1 %v1852_v51, %s2009_s16  ;;  %v1668_v51 = vld [vmem:[%s2379_s9] ss:$0 sm:$0xff] }
 0x4c1   :  { %v1038_v52 = vpop.f32.mrf.mxu0 }
 0x4c2   :  { %1067 = vrot.lane.b32.xlu0 %v1038_v52, %s2009_s16 }
 0x4c4   :  { %v1954_v53 = vpop.eup %1953 }
 0x4c5   :  { %v1663_v54 = vadd.f32 -1.0, %v1954_v53 }
 0x4c7   :  { %v1855_v56 = vpop.f32.mrf.mxu0  ;;  %v1127_v60 = vmul.f32 1.6732632, %v1663_v54 }
 0x4c8   :  { %v1956_v58 = vpop.eup %1955 }
 0x4c9   :  { %v1048_v59 = vpop.f32.mrf.mxu0  ;;  %v1662_v7 = vadd.f32 -1.0, %v1956_v58  ;;  %v1133_v6 = vsel %vm1103_vm1, %v1097_v45, %v1127_v60 }
 0x4ca   :  { %1071 = vrot.lane.b32.xlu1 %v1048_v59, %s2009_s16  ;;  %v1139_v62 = vmul.f32 1.050701, %v1133_v6 }
 0x4cb   :  { %v1126_v61 = vmul.f32 1.6732632, %v1662_v7 }
 0x4cd   :  { %v1132_v0 = vsel %vm1102_vm2, %v1096_v49, %v1126_v61  ;;  %vm1590_vm2 = vcmask 25600  }
 0x4ce   :  { %1073 = vrot.lane.b32.xlu1 %v1855_v56, %s2009_s16  ;;  %v1138_v1 = vmul.f32 1.050701, %v1132_v0 }
 0x4d2   :  { %1163 = vrot.lane.b32.xlu1 %v1139_v62, %s2010_s8 }
 0x4d6   :  { %1161 = vrot.lane.b32.xlu1 %v1138_v1, %s2010_s8 }
 0x532   :  { %v1070_v3 = vpop.permute.xlu1 %1069 }
 0x533   :  { %v1084_v9 = vadd.f32 %v2162_v20, %v1070_v3 }
 0x534   :  { %v1068_v4 = vpop.permute.xlu0 %1067 }
 0x535   :  { %v1099_v10 = vadd.f32 %v2250_v42, %v1084_v9  ;;  %v1083_v11 = vadd.f32 %v1068_v4, %v2165_v23 }
 0x537   :  { %v1114_v12 = vmul.f32 1.442695, %v1099_v10  ;;  %v1098_v8 = vadd.f32 %v2250_v42, %v1083_v11  ;;  %vm1105_vm3 = vcmp.gt.f32.partialorder %v1099_v10, 0.0 }
 0x539   :  { %1957 = vpow2.f32 %v1114_v12  ;;  %v1112_v13 = vmul.f32 1.442695, %v1098_v8  ;;  %vm1104_vm4 = vcmp.gt.f32.partialorder %v1098_v8, 0.0 }
 0x53b   :  { %1959 = vpow2.f32 %v1112_v13 }
 0x53c   :  { %v1072_v14 = vpop.permute.xlu1 %1071 }
 0x53d   :  { %v1085_v16 = vadd.f32 %v1072_v14, %v2171_v29 }
 0x53f   :  { %v1100_v18 = vadd.f32 %v2250_v42, %v1085_v16 }
 0x540   :  { %v1074_v19 = vpop.permute.xlu1 %1073 }
 0x541   :  { %v1116_v21 = vmul.f32 1.442695, %v1100_v18  ;;  %v1086_v20 = vadd.f32 %v2168_v26, %v1074_v19  ;;  %vm1106_vm5 = vcmp.gt.f32.partialorder %v1100_v18, 0.0 }
 0x543   :  { %1961 = vpow2.f32 %v1116_v21  ;;  %v1101_v22 = vadd.f32 %v2250_v42, %v1086_v20 }
 0x544   :  { %v1164_v24 = vpop.permute.xlu1 %1163 }
 0x545   :  { %v1118_v23 = vmul.f32 1.442695, %v1101_v22  ;;  %vm1107_vm6 = vcmp.gt.f32.partialorder %v1101_v22, 0.0 }
 0x546   :  { %v1958_v25 = vpop.eup %1957 }
 0x547   :  { %1963 = vpow2.f32 %v1118_v23  ;;  %v1665_v27 = vadd.f32 -1.0, %v1958_v25 }
 0x548   :  { %v1960_v2 = vpop.eup %1959  ;;  %v1162_v5 = vpop.permute.xlu1 %1161 }
 0x549   :  { %1864 = vmatprep.mubr.msk.f32.mxu1 %vm58_vm0, %v1162_v5  ;;  %v1129_v28 = vmul.f32 1.6732632, %v1665_v27  ;;  %v1664_v29 = vadd.f32 -1.0, %v1960_v2 }
 0x54a   :  { %1865 = vmatmul.mubr.msk.f32.vlgmr.msra.gmra.mxu1 %vm58_vm0, %v1164_v24 }
 0x54b   :  { %v1135_v30 = vsel %vm1105_vm3, %v1099_v10, %v1129_v28  ;;  %v1128_v31 = vmul.f32 1.6732632, %v1664_v29 }
 0x54c   :  { %v1141_v26 = vmul.f32 1.050701, %v1135_v30 }
 0x54d   :  { %v1134_v32 = vsel %vm1104_vm4, %v1098_v8, %v1128_v31 }
 0x54e   :  { %1167 = vrot.lane.b32.xlu1 %v1141_v26, %s2010_s8  ;;  %v1140_v34 = vmul.f32 1.050701, %v1134_v32 }
 0x550   :  { %v1962_v33 = vpop.eup %1961 }
 0x551   :  { %v1666_v35 = vadd.f32 -1.0, %v1962_v33 }
 0x552   :  { %1165 = vrot.lane.b32.xlu1 %v1140_v34, %s2010_s8  ;;  %v1322_v34 = vld [vmem:[%s2371_s1] sm:$0xf] }
 0x553   :  { %v1130_v36 = vmul.f32 1.6732632, %v1666_v35  ;;  %v1410_v35 = vld [vmem:[%s2380_s10 + $0x38] sm:$0xff] }
 0x554   :  { %v1964_v37 = vpop.eup %1963  ;;  %1889 = vmatpush3.msra.mxu1 %v1410_v35 }
 0x555   :  { %v1136_v38 = vsel %vm1106_vm5, %v1100_v18, %v1130_v36  ;;  %v1667_v39 = vadd.f32 -1.0, %v1964_v37  ;;  %v1409_v36 = vld [vmem:[%s2380_s10 + $0x30] sm:$0xff]  ;;  %1890 = vmatprep.subr.mxu1 %v2007_v63  ;;  %v1408_v37 = vld [vmem:[%s2380_s10 + $0x28] sm:$0xff] }
 0x556   :  { %v1142_v40 = vmul.f32 1.050701, %v1136_v38  ;;  %1891 = vmatpush3.msra.mxu1 %v1409_v36  ;;  %v1407_v38 = vld [vmem:[%s2380_s10 + $0x20] sm:$0xff] }
 0x557   :  { %v1131_v41 = vmul.f32 1.6732632, %v1667_v39  ;;  %1892 = vmatprep.subr.mxu1 %v2007_v63  ;;  %v1406_v39 = vld [vmem:[%s2380_s10 + $0x18] sm:$0xff] }
 0x558   :  { %1169 = vrot.lane.b32.xlu1 %v1142_v40, %s2010_s8  ;;  %1893 = vmatpush3.msra.mxu1 %v1408_v37  ;;  %v1405_v40 = vld [vmem:[%s2380_s10 + $0x10] sm:$0xff] }
 0x559   :  { %v1137_v42 = vsel %vm1107_vm6, %v1101_v22, %v1131_v41  ;;  %1894 = vmatprep.subr.mxu1 %v2007_v63  ;;  %v1404_v41 = vld [vmem:[%s2380_s10 + $0x8] sm:$0xff] }
 0x55a   :  { %v1143_v43 = vmul.f32 1.050701, %v1137_v42  ;;  %1895 = vmatpush3.msra.mxu1 %v1407_v38  ;;  %v1403_v42 = vld [vmem:[%s2380_s10] sm:$0xff] }
 0x55b   :  { %1896 = vmatprep.subr.mxu1 %v2007_v63 }
 0x55c   :  { %1171 = vrot.lane.b32.xlu1 %v1143_v43, %s2010_s8  ;;  %1897 = vmatpush3.msra.mxu1 %v1406_v39 }
 0x55d   :  { %1898 = vmatprep.subr.mxu1 %v2007_v63 }
 0x55e   :  { %1899 = vmatpush3.msra.mxu1 %v1405_v40 }
 0x55f   :  { %1900 = vmatprep.subr.mxu1 %v2007_v63 }
 0x560   :  { %1901 = vmatpush3.msra.mxu1 %v1404_v41 }
 0x561   :  { %1902 = vmatprep.subr.mxu1 %v2007_v63 }
 0x562   :  { %1903 = vmatpush3.msra.mxu1 %v1403_v42 }
 0x5c0   :  { %v1168_v44 = vpop.permute.xlu1 %1167 }
 0x5c4   :  { %v1166_v45 = vpop.permute.xlu1 %1165 }
 0x5c5   :  { %1867 = vmatprep.mubr.msk.f32.mxu1 %vm58_vm0, %v1166_v45 }
 0x5c6   :  { %1868 = vmatmul.mubr.msk.f32.gmra.mxu1 %vm58_vm0, %v1168_v44 }
 0x5ca   :  { %v1170_v46 = vpop.permute.xlu1 %1169 }
 0x5cb   :  { %1870 = vmatprep.mubr.msk.f32.mxu1 %vm58_vm0, %v1170_v46 }
 0x5ce   :  { %v1172_v47 = vpop.permute.xlu1 %1171 }
 0x5cf   :  { %1871 = vmatmul.mubr.msk.f32.gmra.mxu1 %vm58_vm0, %v1172_v47 }
 0x5d0   :  { %1904 = vmatprep.mubr.msk.f32.mxu1 %vm2008_vm7, %v2007_v63 }
 0x60a   :  { %v1866_v48 = vpop.f32.mrf.mxu1 }
 0x60b   :  { %v1257_v17 = vadd.f32 %v1866_v48, %v1668_v51  ;;  %v1502_v48 = vld [vmem:[%s2382_s12 + $0x18] sm:$0xff] }
 0x60c   :  { %v1251_v49 = vpop.f32.mrf.mxu1 }
 0x60d   :  { %v1252_v55 = vadd.f32 %v1668_v51, %v1251_v49  ;;  %v1288_v57 = vmul.f32 1.442695, %v1257_v17  ;;  %vm1281_vm12 = vcmp.gt.f32.partialorder %v1257_v17, 0.0  ;;  %v1501_v49 = vld [vmem:[%s2382_s12 + $0x10] sm:$0xff] }
 0x60f   :  { %v1286_v60 = vmul.f32 1.442695, %v1252_v55  ;;  %vm1280_vm13 = vcmp.gt.f32.partialorder %v1252_v55, 0.0 }
 0x686   :  { %v1869_v50 = vpop.f32.mrf.mxu1 }
 0x687   :  { %v1267_v52 = vadd.f32 %v1869_v50, %v1668_v51  ;;  %v1500_v50 = vld [vmem:[%s2382_s12 + $0x8] sm:$0xff] }
 0x688   :  { %v1261_v15 = vpop.f32.mrf.mxu1 }
 0x689   :  { %v1262_v53 = vadd.f32 %v1668_v51, %v1261_v15  ;;  %v1292_v54 = vmul.f32 1.442695, %v1267_v52  ;;  %vm1283_vm9 = vcmp.gt.f32.partialorder %v1267_v52, 0.0 }
 0x68b   :  { %v1290_v56 = vmul.f32 1.442695, %v1262_v53  ;;  %1965 = vpow2.f32 %v1292_v54  ;;  %vm1282_vm11 = vcmp.gt.f32.partialorder %v1262_v53, 0.0 }
 0x68d   :  { %1967 = vpow2.f32 %v1290_v56 }
 0x68e   :  { %1969 = vpow2.f32 %v1288_v57 }
 0x68f   :  { %v1872_v58 = vpop.f32.mrf.mxu1 }
 0x690   :  { %v1277_v59 = vadd.f32 %v1872_v58, %v1668_v51 }
 0x691   :  { %v1271_v7 = vpop.f32.mrf.mxu1 }
 0x692   :  { %v1296_v6 = vmul.f32 1.442695, %v1277_v59  ;;  %v1272_v61 = vadd.f32 %v1668_v51, %v1271_v7  ;;  %vm1285_vm8 = vcmp.gt.f32.partialorder %v1277_v59, 0.0  ;;  %v1499_v51 = vld [vmem:[%s2382_s12] sm:$0xff] }
 0x694   :  { %1971 = vpow2.f32 %v1296_v6  ;;  %v1294_v62 = vmul.f32 1.442695, %v1272_v61  ;;  %vm1284_vm10 = vcmp.gt.f32.partialorder %v1272_v61, 0.0 }
 0x695   :  { %1973 = vpow2.f32 %v1286_v60 }
 0x696   :  { %1975 = vpow2.f32 %v1294_v62 }
 0x698   :  { %v1966_v0 = vpop.eup %1965 }
 0x699   :  { %v1678_v9 = vadd.f32 -1.0, %v1966_v0 }
 0x69a   :  { %v1968_v1 = vpop.eup %1967 }
 0x69b   :  { %v1970_v3 = vpop.eup %1969  ;;  %v1677_v11 = vadd.f32 -1.0, %v1968_v1  ;;  %v1307_v14 = vmul.f32 1.6732632, %v1678_v9 }
 0x69c   :  { %v1676_v13 = vadd.f32 -1.0, %v1970_v3 }
 0x69d   :  { %v1306_v21 = vmul.f32 1.6732632, %v1677_v11  ;;  %v1313_v25 = vsel %vm1283_vm9, %v1267_v52, %v1307_v14  ;;  %v1682_v52 = vld [vmem:[%s2381_s11] ss:$0 sm:$0xff]  ;;  %s2011_s11 = smov [#allocation2]  }
 0x69e   :  { %v1305_v23 = vmul.f32 1.6732632, %v1676_v13  ;;  %v1319_v29 = vmul.f32 1.050701, %v1313_v25 }
 0x69f   :  { %v1312_v28 = vsel %vm1282_vm11, %v1262_v53, %v1306_v21 }
 0x6a0   :  { %v1311_v30 = vsel %vm1281_vm12, %v1257_v17, %v1305_v23  ;;  %v1318_v31 = vmul.f32 1.050701, %v1312_v28 }
 0x6a1   :  { %v1972_v4 = vpop.eup %1971  ;;  %v1317_v32 = vmul.f32 1.050701, %v1311_v30 }
 0x6a2   :  { %v1974_v10 = vpop.eup %1973  ;;  %v1680_v12 = vadd.f32 -1.0, %v1972_v4 }
 0x6a3   :  { %v1976_v8 = vpop.eup %1975  ;;  %v1675_v19 = vadd.f32 -1.0, %v1974_v10 }
 0x6a4   :  { %v1309_v16 = vmul.f32 1.6732632, %v1680_v12  ;;  %v1679_v18 = vadd.f32 -1.0, %v1976_v8 }
 0x6a5   :  { %v1304_v5 = vmul.f32 1.6732632, %v1675_v19 }
 0x6a6   :  { %v1315_v20 = vsel %vm1285_vm8, %v1277_v59, %v1309_v16  ;;  %v1308_v22 = vmul.f32 1.6732632, %v1679_v18 }
 0x6a7   :  { %v1321_v24 = vmul.f32 1.050701, %v1315_v20  ;;  %v1310_v26 = vsel %vm1280_vm13, %v1252_v55, %v1304_v5 }
 0x6a8   :  { %v1314_v27 = vsel %vm1284_vm10, %v1272_v61, %v1308_v22  ;;  %v1316_v33 = vmul.f32 1.050701, %v1310_v26 }
 0x6a9   :  { %v1320_v2 = vmul.f32 1.050701, %v1314_v27  ;;  %1874 = vmatpush3.msra.mxu0 %v1321_v24 }
 0x6aa   :  { %1875 = vmatprep.subr.mxu0 %v2007_v63 }
 0x6ab   :  { %1876 = vmatpush3.msra.mxu0 %v1320_v2 }
 0x6ac   :  { %1877 = vmatprep.subr.mxu0 %v2007_v63 }
 0x6ad   :  { %1878 = vmatpush3.msra.mxu0 %v1319_v29 }
 0x6ae   :  { %1879 = vmatprep.subr.mxu0 %v2007_v63 }
 0x6af   :  { %1880 = vmatpush3.msra.mxu0 %v1318_v31 }
 0x6b0   :  { %1881 = vmatprep.subr.mxu0 %v2007_v63 }
 0x6b1   :  { %1882 = vmatpush3.msra.mxu0 %v1317_v32 }
 0x6b2   :  { %1883 = vmatprep.subr.mxu0 %v2007_v63 }
 0x6b3   :  { %1884 = vmatpush3.msra.mxu0 %v1316_v33 }
 0x6b4   :  { %1886 = vmatmul.mubr.msk.f32.vlgmr.msra.gmra.mxu0 %vm1323_vm14, %v1322_v34  ;;  %1907 = vmatprep.subr.mxu0 %v2007_v63 }
 0x6b5   :  { %1915 = vmatprep.mubr.msk.f32.mxu0 %vm2008_vm7, %v2007_v63  ;;  %vm1418_vm7 = vcmask 523264   ;;  %1908 = vmatpush3.msra.mxu0 %v1502_v48 }
 0x6b6   :  { %1909 = vmatprep.subr.mxu0 %v2007_v63 }
 0x6b7   :  { %1910 = vmatpush3.msra.mxu0 %v1501_v49 }
 0x6b8   :  { %1911 = vmatprep.subr.mxu0 %v2007_v63 }
 0x6b9   :  { %1912 = vmatpush3.msra.mxu0 %v1500_v50 }
 0x6ba   :  { %1913 = vmatprep.subr.mxu0 %v2007_v63  ;;  %v1685_v63 = vld [vmem:[%s2383_s13] ss:$0 sm:$0xff]  ;;  %s1609_s13 = sshll.u32 %s2011_s11, 4  ;;  %s1610_s13 = int_to_ptr.vmem [resolvable:$true] %s1609_s13 }
 0x6bb   :  { %1914 = vmatpush3.msra.mxu0 %v1499_v51  ;;  %s1985_s4 = scalar_lea.vmem %s1610_s13, 32  ;;  %p1990_p1 = scmp.lt.s32.totalorder %s1610_s13, %s1610_s13 }
 0x6bc   :  { %p1986_p0 = scmp.ne.s32.totalorder %s1610_s13, %s1985_s4  ;;  %p1991_p2 = scmp.lt.s32.totalorder %s1985_s4, %s1985_s4 }
 0x6be   :  { %p1992_p3 = por %p1991_p2, %p1990_p1 }
 0x6c0   :  { %p1993_p4 = pnand %p1992_p3, %p1986_p0 }
 0x774   :  { %v1393_v43 = vpop.f32.mrf.mxu0 }
 0x775   :  { %v1398_v44 = vrot.slane %v1393_v43, 2 }
 0x776   :  { %v1887_v45 = vpop.f32.mrf.mxu0 }
 0x777   :  { %1399 = vrot.lane.b32.xlu1 %v1398_v44, %s2009_s16 }
 0x7e9   :  { %v1400_v46 = vpop.permute.xlu1 %1399 }
 0x7ea   :  { %v1402_v47 = vsel %vm58_vm0, %v1393_v43, %v1400_v46 }
 0x7eb   :  { %1905 = vmatmul.mubr.msk.f32.vlgmr.msra.gmra.mxu1 %vm1418_vm7, %v1402_v47 }
 0x8ab   :  { %v1488_v15 = vpop.f32.mrf.mxu1 }
 0x8ac   :  { %v1489_v53 = vadd.f32 %v1682_v52, %v1488_v15 }
 0x8ad   :  { %v1906_v17 = vpop.f32.mrf.mxu1 }
 0x8ae   :  { %v1493_v54 = vmul.f32 1.442695, %v1489_v53  ;;  %vm1492_vm15 = vcmp.gt.f32.partialorder %v1489_v53, 0.0 }
 0x8b0   :  { %1977 = vpow2.f32 %v1493_v54 }
 0x8bd   :  { %v1978_v55 = vpop.eup %1977 }
 0x8be   :  { %v1684_v56 = vadd.f32 -1.0, %v1978_v55 }
 0x8c0   :  { %v1496_v57 = vmul.f32 1.6732632, %v1684_v56 }
 0x8c2   :  { %v1497_v58 = vsel %vm1492_vm15, %v1489_v53, %v1496_v57 }
 0x8c3   :  { %v1498_v59 = vmul.f32 1.050701, %v1497_v58 }
 0x8c5   :  { %1916 = vmatmul.mubr.msk.f32.vlgmr.msra.gmra.mxu0 %vm58_vm0, %v1498_v59 }
 0x985   :  { %v1579_v60 = vpop.f32.mrf.mxu0 }
 0x986   :  { %v1580_v7 = vadd.f32 %v1685_v63, %v1579_v60 }
 0x987   :  { %v1917_v6 = vpop.f32.mrf.mxu0 }
 0x988   :  { %v1584_v61 = vmul.f32 1.442695, %v1580_v7  ;;  %vm1583_vm1 = vcmp.gt.f32.partialorder %v1580_v7, 0.0 }
 0x98a   :  { %1979 = vpow2.f32 %v1584_v61 }
 0x997   :  { %v1980_v62 = vpop.eup %1979 }
 0x998   :  { %v1687_v0 = vadd.f32 -1.0, %v1980_v62 }
 0x99a   :  { %v1587_v1 = vmul.f32 1.6732632, %v1687_v0 }
 0x99c   :  { %v1588_v3 = vsel %vm1583_vm1, %v1580_v7, %v1587_v1 }
 0x99d   :  { %v1589_v9 = vmul.f32 1.050701, %v1588_v3 }
 0x99f   :  { %v1591_v4 = vsel %vm1590_vm2, %v1589_v9, -inf }
 0x9a0   :  { %1592 = vmax.xlane.f32.xlu1 %v1591_v4 }
 0xa29   :  { %v1593_v10 = vpop.xlane.xlu1 %1592 }
 0xa2a   :  { %v1594_v11 = vsub.f32 %v1589_v9, %v1593_v10 }
 0xa2c   :  { %v1595_v12 = vmul.f32 1.442695, %v1594_v11 }
 0xa2e   :  { %1981 = vpow2.f32 %v1595_v12 }
 0xa3b   :  { %v1982_v8 = vpop.eup %1981 }
 0xa3c   :  { %v1597_v13 = vsel %vm1590_vm2, %v1982_v8, 0.0 }
 0xa3d   :  { %1598 = vadd.xlane.f32.xlu0 %v1597_v13 }
 0xac6   :  { %v1599_v14 = vpop.xlane.xlu0 %1598 }
 0xac7   :  { %1983 = vrcp.f32 %v1599_v14 }
 0xad4   :  { %v1984_v16 = vpop.eup %1983 }
 0xad5   :  { %v1601_v18 = vmul.f32 %v1984_v16, %v1982_v8 }
 0xad7   :  { %1602 = vst.msk [vmem:[#allocation2] sm:$0x3] %vm1590_vm2, %v1601_v18 }
 0xad8   :  { %1996 = shalt.err (!%p1993_p4)
}
 0xad9   :  { %1612 = dma.vmem_to_hbm [thread:$0]  %s1610_s13, 32, %s2384_s14, [#allocation3]  }
 0xada   :  { %2005 = dma.done.wait [#allocation3], 32  }
 0xadb   :  { %2006 = vsyncadd [#allocation3], 4294967264 }
 0xadc   :  { %1616 = vsyncpa [#allocation3], 1 }

</bundles_post_ra>
